<compile_context>
chip_gen: v5e
topology: v5e:2x2
jax: 0.10.0
libtpu: 0.0.40
codegen_flags: <defaults>
</compile_context>

<pallas_src>
import functools
import math

import jax
import jax.numpy as jnp
from jax.experimental import pallas as pl
from jax.experimental.pallas import tpu as pltpu


def noisy_topk_router_kernel(x_ref, noise_ref, w_ref, b_ref,
                             gate_ref, idx_ref, *, top_k, num_experts):
    # Fused router GEMM for both heads: (Tt, D) @ (D, 2E) -> (Tt, 2E), f32 acc.
    # No operand upcast: bf16 x/w uses the native bf16 MXU path.
    fused = jnp.dot(x_ref[...], w_ref[...], preferred_element_type=jnp.float32)
    fused = fused + b_ref[...].astype(jnp.float32)

    # One XLU transpose -> lane-dense layout: tokens ride the 128-wide lane axis.
    fused_t = fused.T                                   # (2E, Tt)
    logits = fused_t[:num_experts, :]                   # sublane-aligned split
    nlogits = fused_t[num_experts:, :]                  # (E % 8 == 0 -> no relayout)

    # Numerically stable softplus in f32 (exp / log1p run on the EUP).
    softplus = jnp.maximum(nlogits, 0.0) + jnp.log1p(jnp.exp(-jnp.abs(nlogits)))
    noisy = logits + noise_ref[...].astype(jnp.float32) * softplus   # (E, Tt)

    E, Tt = noisy.shape
    expert_ids = jax.lax.broadcasted_iota(jnp.int32, (E, Tt), 0)

    # Iterative top-k with a fused max+argmax sweep over the E expert rows.
    # Strict '>' keeps the smallest index on exact ties (same as lax.top_k);
    # removing the winner each round yields descending values (torch.topk order).
    masked = noisy
    selected = jnp.zeros((E, Tt), dtype=jnp.bool_)
    idx_rows = []
    top1 = None
    for k in range(top_k):
        best_v = masked[0:1, :]
        best_i = jnp.zeros((1, Tt), dtype=jnp.int32)
        for e in range(1, E):
            v = masked[e:e + 1, :]
            take = v > best_v
            best_v = jnp.where(take, v, best_v)
            best_i = jnp.where(take, jnp.int32(e), best_i)
        if k == 0:
            top1 = best_v                  # == row max over all experts
        idx_rows.append(best_i)
        hit = expert_ids == best_i
        selected = selected | hit
        if k + 1 < top_k:
            masked = jnp.where(hit, -jnp.inf, masked)

    # Sparse softmax over experts: non-top-k entries are exactly 0.
    z = jnp.where(selected, noisy, -jnp.inf)
    p = jnp.exp(z - top1)                                 # top1 is max of z
    denom = jnp.sum(p, axis=0, keepdims=True)             # (1, Tt)
    gate_ref[...] = (p * pl.reciprocal(denom, approx=False)).astype(gate_ref.dtype)
    idx_ref[...] = jnp.concatenate(idx_rows, axis=0)      # (top_k, Tt)


def _round_up(a, m):
    return ((a + m - 1) // m) * m


def _choose_tile_t(T, D, itemsize, cap=2048, x_tile_budget=24 * 1024 * 1024):
    """Pick a 128-aligned token tile.

    Large enough to amortize the ~0.35us per-grid-step overhead, small enough
    that the double-buffered x tile stays well inside VMEM on every TPU
    generation (v7x: 64 MiB physical), and sized so the grid has >= 2
    'parallel' steps whenever there is enough work (both v7x TensorCores busy).
    """
    budget_rows = (x_tile_budget // max(1, 2 * D * itemsize)) // 128 * 128
    t = max(128, min(cap, budget_rows))
    t = min(t, _round_up(T, 128))
    if T > 128:                         # aim for at least 2 grid steps
        t = min(t, _round_up(pl.cdiv(T, 2), 128))
    return max(128, t)


def fuse_router_params(w_route, b_route, w_noise, b_noise):
    """Fuse the two router heads once, at parameter-init time (hoisted)."""
    w_fused = jnp.concatenate([w_route, w_noise], axis=1)            # (D, 2E)
    b_fused = jnp.concatenate([b_route, b_noise]).reshape(1, -1)     # (1, 2E)
    return w_fused, b_fused


def noisy_topk_router(x, noise, w_fused, b_fused, *, top_k, tile_t=None):
    *lead, D = x.shape
    T = math.prod(lead) if lead else 1
    two_e = w_fused.shape[1]
    E = two_e // 2
    assert 0 < top_k <= E, "top_k must be in [1, num_experts]"

    x_flat = x.reshape(T, D)
    # Lane-dense noise layout: (E, T) -> each in-kernel vreg row holds 128 tokens
    # and the DMA rows are contiguous (tiny host transpose of a small tensor).
    noise_t = noise.reshape(T, E).T

    itemsize = jnp.dtype(x.dtype).itemsize
    if tile_t is None:
        tile_t = _choose_tile_t(T, D, itemsize)
    else:
        tile_t = max(128, _round_up(tile_t, 128))
    n_tiles = pl.cdiv(T, tile_t)        # ragged tail handled by Pallas masking

    # Only raise the scoped-VMEM limit when the per-step footprint would exceed
    # v5e's conservative 16 MiB default (no-op for small routers like the demo).
    noise_isz = jnp.dtype(noise.dtype).itemsize
    vmem_est = 2 * (tile_t * D * itemsize + E * tile_t * noise_isz
                    + D * two_e * itemsize + two_e * itemsize
                    + E * tile_t * itemsize + top_k * tile_t * 4)
    compiler_kwargs = dict(dimension_semantics=("parallel",))
    if vmem_est > 12 * 1024 * 1024:
        compiler_kwargs["vmem_limit_bytes"] = int(min(2 * vmem_est, 100 * 2**20))

    kernel = functools.partial(noisy_topk_router_kernel,
                               top_k=top_k, num_experts=E)
    gates_t, idx_t = pl.pallas_call(
        kernel,
        out_shape=(jax.ShapeDtypeStruct((E, T), x.dtype),
                   jax.ShapeDtypeStruct((top_k, T), jnp.int32)),
        grid_spec=pltpu.PrefetchScalarGridSpec(
            num_scalar_prefetch=0,
            grid=(n_tiles,),
            in_specs=[
                pl.BlockSpec((tile_t, D), lambda i: (i, 0)),      # x tokens
                pl.BlockSpec((E, tile_t), lambda i: (0, i)),      # noise (E, T)
                pl.BlockSpec((D, two_e), lambda i: (0, 0)),       # fused router W
                pl.BlockSpec((1, two_e), lambda i: (0, 0)),       # fused router b
            ],
            out_specs=(pl.BlockSpec((E, tile_t), lambda i: (0, i)),
                       pl.BlockSpec((top_k, tile_t), lambda i: (0, i))),
        ),
        compiler_params=pltpu.CompilerParams(**compiler_kwargs),
    )(x_flat, noise_t, w_fused, b_fused)

    gates = gates_t.T.reshape(*lead, E)
    idx = idx_t.T.reshape(*lead, top_k)
    return gates, idx


def reference(x, noise, w_route, b_route, w_noise, b_noise, *, top_k):
    """Pure-JAX reference with identical semantics (for verification)."""
    logits = x @ w_route + b_route
    nlogits = x @ w_noise + b_noise
    noisy = logits + noise * jax.nn.softplus(nlogits)
    _, top_idx = jax.lax.top_k(noisy, top_k)
    E = noisy.shape[-1]
    sel = jnp.any(top_idx[..., None] == jnp.arange(E), axis=-2)
    gates = jax.nn.softmax(jnp.where(sel, noisy, -jnp.inf), axis=-1)
    return gates, top_idx


if __name__ == "__main__":
    n_embed, num_experts, top_k = 32, 8, 2

    key = jax.random.PRNGKey(0)
    k_x, k_n, k_wr, k_br, k_wn, k_bn, k_x2, k_n2 = jax.random.split(key, 8)

    s = 0.1
    w_route = s * jax.random.normal(k_wr, (n_embed, num_experts), jnp.float32)
    b_route = s * jax.random.normal(k_br, (num_experts,), jnp.float32)
    w_noise = s * jax.random.normal(k_wn, (n_embed, num_experts), jnp.float32)
    b_noise = s * jax.random.normal(k_bn, (num_experts,), jnp.float32)

    # Fused once at "init" time (hoisted out of the per-forward path).
    w_fused, b_fused = fuse_router_params(w_route, b_route, w_noise, b_noise)

    def run_case(kx, kn, batch, seq):
        x = jax.random.normal(kx, (batch, seq, n_embed), jnp.float32)
        # torch.randn_like equivalent, generated outside the kernel so results
        # are exactly reproducible against the pure-JAX reference.
        noise = jax.random.normal(kn, (batch, seq, num_experts), jnp.float32)

        gates, idx = noisy_topk_router(x, noise, w_fused, b_fused, top_k=top_k)
        jax.block_until_ready((gates, idx))

        ref_gates, ref_idx = reference(x, noise, w_route, b_route,
                                       w_noise, b_noise, top_k=top_k)
        assert gates.shape == (batch, seq, num_experts)
        assert idx.shape == (batch, seq, top_k)
        assert jnp.allclose(gates, ref_gates, atol=1e-5, rtol=1e-5), \
            "router_output mismatch vs pure-JAX reference"
        assert jnp.array_equal(idx, ref_idx.astype(jnp.int32)), \
            "top-k indices mismatch vs pure-JAX reference"

    # Case 1: tiny shape -> a single (partial) 128-token tile.
    run_case(k_x, k_n, batch=2, seq=8)
    # Case 2: ragged multi-tile shape (T=300 -> 2 tiles, 44-token tail,
    # no host-side padding anywhere).
    run_case(k_x2, k_n2, batch=3, seq=100)

    print("KERNEL_OK")
</pallas_src>

<mosaic_0001>
module attributes {stable_mosaic.version = 11 : i64} {
  func.func @noisy_topk_router_kernel(%arg0: i32, %arg1: memref<128x32xf32, #tpu.memory_space<vmem>>, %arg2: memref<8x128xf32, #tpu.memory_space<vmem>>, %arg3: memref<32x16xf32, #tpu.memory_space<vmem>>, %arg4: memref<1x16xf32, #tpu.memory_space<vmem>>, %arg5: memref<8x128xf32, #tpu.memory_space<vmem>>, %arg6: memref<2x128xi32, #tpu.memory_space<vmem>>) attributes {dimension_semantics = [#tpu.dimension_semantics<parallel>], iteration_bounds = array<i64: 1>, scalar_prefetch = 0 : i64, scratch_operands = 0 : i64, tpu.core_type = #tpu.core_type<tc>, window_params = [{transform_indices = @transform_0, window_bounds = array<i64: 128, 32>}, {transform_indices = @transform_1, window_bounds = array<i64: 8, 128>}, {pipeline_mode = #tpu.pipeline_mode<synchronous>, transform_indices = @transform_2, window_bounds = array<i64: 32, 16>}, {pipeline_mode = #tpu.pipeline_mode<synchronous>, transform_indices = @transform_3, window_bounds = array<i64: 1, 16>}, {transform_indices = @transform_4, window_bounds = array<i64: 8, 128>}, {transform_indices = @transform_5, window_bounds = array<i64: 2, 128>}]} {
    %c0 = arith.constant 0 : index
    %c0_0 = arith.constant 0 : index
    %0 = vector.load %arg1[%c0, %c0_0] : memref<128x32xf32, #tpu.memory_space<vmem>>, vector<128x32xf32>
    %c0_1 = arith.constant 0 : index
    %c0_2 = arith.constant 0 : index
    %1 = vector.load %arg3[%c0_1, %c0_2] : memref<32x16xf32, #tpu.memory_space<vmem>>, vector<32x16xf32>
    %cst = arith.constant dense<0.000000e+00> : vector<128x16xf32>
    %2 = tpu.matmul %0, %1, %cst {dimension_numbers = #tpu.dot_dimension_numbers<[1], [0], [0], [1], [0, 0, 1, 1], [], []>} : vector<128x32xf32>, vector<32x16xf32>, vector<128x16xf32> -> vector<128x16xf32>
    %c0_3 = arith.constant 0 : index
    %c0_4 = arith.constant 0 : index
    %3 = vector.load %arg4[%c0_3, %c0_4] : memref<1x16xf32, #tpu.memory_space<vmem>>, vector<1x16xf32>
    %4 = vector.broadcast %3 : vector<1x16xf32> to vector<128x16xf32>
    %5 = arith.addf %2, %4 : vector<128x16xf32>
    %6 = tpu.transpose %5, [1, 0] : vector<128x16xf32> -> vector<16x128xf32>
    %7 = vector.extract_strided_slice %6 {offsets = [0, 0], sizes = [8, 128], strides = [1, 1]} : vector<16x128xf32> to vector<8x128xf32>
    %8 = vector.extract_strided_slice %6 {offsets = [8, 0], sizes = [8, 128], strides = [1, 1]} : vector<16x128xf32> to vector<8x128xf32>
    %cst_5 = arith.constant 0.000000e+00 : f32
    %9 = vector.broadcast %cst_5 : f32 to vector<8x128xf32>
    %10 = arith.maximumf %8, %9 : vector<8x128xf32>
    %11 = math.absf %8 : vector<8x128xf32>
    %cst_6 = arith.constant 0.000000e+00 : f32
    %12 = vector.broadcast %cst_6 : f32 to vector<8x128xf32>
    %13 = arith.subf %12, %11 : vector<8x128xf32>
    %14 = math.exp %13 : vector<8x128xf32>
    %15 = math.log1p %14 : vector<8x128xf32>
    %16 = arith.addf %10, %15 : vector<8x128xf32>
    %c0_7 = arith.constant 0 : index
    %c0_8 = arith.constant 0 : index
    %17 = vector.load %arg2[%c0_7, %c0_8] : memref<8x128xf32, #tpu.memory_space<vmem>>, vector<8x128xf32>
    %18 = arith.mulf %17, %16 : vector<8x128xf32>
    %19 = arith.addf %7, %18 : vector<8x128xf32>
    %20 = tpu.iota {dimensions = array<i32: 0>} : vector<8x128xi32>
    %false = arith.constant false
    %21 = vector.broadcast %false : i1 to vector<8x128xi1>
    %22 = vector.extract_strided_slice %19 {offsets = [0, 0], sizes = [1, 128], strides = [1, 1]} : vector<8x128xf32> to vector<1x128xf32>
    %c0_i32 = arith.constant 0 : i32
    %23 = vector.broadcast %c0_i32 : i32 to vector<1x128xi32>
    %24 = vector.extract_strided_slice %19 {offsets = [1, 0], sizes = [1, 128], strides = [1, 1]} : vector<8x128xf32> to vector<1x128xf32>
    %25 = arith.cmpf ogt, %24, %22 : vector<1x128xf32>
    %26 = arith.select %25, %24, %22 : vector<1x128xi1>, vector<1x128xf32>
    %c1_i32 = arith.constant 1 : i32
    %27 = vector.broadcast %c1_i32 : i32 to vector<1x128xi32>
    %28 = arith.select %25, %27, %23 : vector<1x128xi1>, vector<1x128xi32>
    %29 = vector.extract_strided_slice %19 {offsets = [2, 0], sizes = [1, 128], strides = [1, 1]} : vector<8x128xf32> to vector<1x128xf32>
    %30 = arith.cmpf ogt, %29, %26 : vector<1x128xf32>
    %31 = arith.select %30, %29, %26 : vector<1x128xi1>, vector<1x128xf32>
    %c2_i32 = arith.constant 2 : i32
    %32 = vector.broadcast %c2_i32 : i32 to vector<1x128xi32>
    %33 = arith.select %30, %32, %28 : vector<1x128xi1>, vector<1x128xi32>
    %34 = vector.extract_strided_slice %19 {offsets = [3, 0], sizes = [1, 128], strides = [1, 1]} : vector<8x128xf32> to vector<1x128xf32>
    %35 = arith.cmpf ogt, %34, %31 : vector<1x128xf32>
    %36 = arith.select %35, %34, %31 : vector<1x128xi1>, vector<1x128xf32>
    %c3_i32 = arith.constant 3 : i32
    %37 = vector.broadcast %c3_i32 : i32 to vector<1x128xi32>
    %38 = arith.select %35, %37, %33 : vector<1x128xi1>, vector<1x128xi32>
    %39 = vector.extract_strided_slice %19 {offsets = [4, 0], sizes = [1, 128], strides = [1, 1]} : vector<8x128xf32> to vector<1x128xf32>
    %40 = arith.cmpf ogt, %39, %36 : vector<1x128xf32>
    %41 = arith.select %40, %39, %36 : vector<1x128xi1>, vector<1x128xf32>
    %c4_i32 = arith.constant 4 : i32
    %42 = vector.broadcast %c4_i32 : i32 to vector<1x128xi32>
    %43 = arith.select %40, %42, %38 : vector<1x128xi1>, vector<1x128xi32>
    %44 = vector.extract_strided_slice %19 {offsets = [5, 0], sizes = [1, 128], strides = [1, 1]} : vector<8x128xf32> to vector<1x128xf32>
    %45 = arith.cmpf ogt, %44, %41 : vector<1x128xf32>
    %46 = arith.select %45, %44, %41 : vector<1x128xi1>, vector<1x128xf32>
    %c5_i32 = arith.constant 5 : i32
    %47 = vector.broadcast %c5_i32 : i32 to vector<1x128xi32>
    %48 = arith.select %45, %47, %43 : vector<1x128xi1>, vector<1x128xi32>
    %49 = vector.extract_strided_slice %19 {offsets = [6, 0], sizes = [1, 128], strides = [1, 1]} : vector<8x128xf32> to vector<1x128xf32>
    %50 = arith.cmpf ogt, %49, %46 : vector<1x128xf32>
    %51 = arith.select %50, %49, %46 : vector<1x128xi1>, vector<1x128xf32>
    %c6_i32 = arith.constant 6 : i32
    %52 = vector.broadcast %c6_i32 : i32 to vector<1x128xi32>
    %53 = arith.select %50, %52, %48 : vector<1x128xi1>, vector<1x128xi32>
    %54 = vector.extract_strided_slice %19 {offsets = [7, 0], sizes = [1, 128], strides = [1, 1]} : vector<8x128xf32> to vector<1x128xf32>
    %55 = arith.cmpf ogt, %54, %51 : vector<1x128xf32>
    %56 = arith.select %55, %54, %51 : vector<1x128xi1>, vector<1x128xf32>
    %c7_i32 = arith.constant 7 : i32
    %57 = vector.broadcast %c7_i32 : i32 to vector<1x128xi32>
    %58 = arith.select %55, %57, %53 : vector<1x128xi1>, vector<1x128xi32>
    %59 = vector.broadcast %58 : vector<1x128xi32> to vector<8x128xi32>
    %60 = arith.cmpi eq, %20, %59 : vector<8x128xi32>
    %61 = arith.ori %21, %60 : vector<8x128xi1>
    %cst_9 = arith.constant 0xFF800000 : f32
    %62 = vector.broadcast %cst_9 : f32 to vector<8x128xf32>
    %63 = arith.select %60, %62, %19 : vector<8x128xi1>, vector<8x128xf32>
    %64 = vector.extract_strided_slice %63 {offsets = [0, 0], sizes = [1, 128], strides = [1, 1]} : vector<8x128xf32> to vector<1x128xf32>
    %c0_i32_10 = arith.constant 0 : i32
    %65 = vector.broadcast %c0_i32_10 : i32 to vector<1x128xi32>
    %66 = vector.extract_strided_slice %63 {offsets = [1, 0], sizes = [1, 128], strides = [1, 1]} : vector<8x128xf32> to vector<1x128xf32>
    %67 = arith.cmpf ogt, %66, %64 : vector<1x128xf32>
    %68 = arith.select %67, %66, %64 : vector<1x128xi1>, vector<1x128xf32>
    %c1_i32_11 = arith.constant 1 : i32
    %69 = vector.broadcast %c1_i32_11 : i32 to vector<1x128xi32>
    %70 = arith.select %67, %69, %65 : vector<1x128xi1>, vector<1x128xi32>
    %71 = vector.extract_strided_slice %63 {offsets = [2, 0], sizes = [1, 128], strides = [1, 1]} : vector<8x128xf32> to vector<1x128xf32>
    %72 = arith.cmpf ogt, %71, %68 : vector<1x128xf32>
    %73 = arith.select %72, %71, %68 : vector<1x128xi1>, vector<1x128xf32>
    %c2_i32_12 = arith.constant 2 : i32
    %74 = vector.broadcast %c2_i32_12 : i32 to vector<1x128xi32>
    %75 = arith.select %72, %74, %70 : vector<1x128xi1>, vector<1x128xi32>
    %76 = vector.extract_strided_slice %63 {offsets = [3, 0], sizes = [1, 128], strides = [1, 1]} : vector<8x128xf32> to vector<1x128xf32>
    %77 = arith.cmpf ogt, %76, %73 : vector<1x128xf32>
    %78 = arith.select %77, %76, %73 : vector<1x128xi1>, vector<1x128xf32>
    %c3_i32_13 = arith.constant 3 : i32
    %79 = vector.broadcast %c3_i32_13 : i32 to vector<1x128xi32>
    %80 = arith.select %77, %79, %75 : vector<1x128xi1>, vector<1x128xi32>
    %81 = vector.extract_strided_slice %63 {offsets = [4, 0], sizes = [1, 128], strides = [1, 1]} : vector<8x128xf32> to vector<1x128xf32>
    %82 = arith.cmpf ogt, %81, %78 : vector<1x128xf32>
    %83 = arith.select %82, %81, %78 : vector<1x128xi1>, vector<1x128xf32>
    %c4_i32_14 = arith.constant 4 : i32
    %84 = vector.broadcast %c4_i32_14 : i32 to vector<1x128xi32>
    %85 = arith.select %82, %84, %80 : vector<1x128xi1>, vector<1x128xi32>
    %86 = vector.extract_strided_slice %63 {offsets = [5, 0], sizes = [1, 128], strides = [1, 1]} : vector<8x128xf32> to vector<1x128xf32>
    %87 = arith.cmpf ogt, %86, %83 : vector<1x128xf32>
    %88 = arith.select %87, %86, %83 : vector<1x128xi1>, vector<1x128xf32>
    %c5_i32_15 = arith.constant 5 : i32
    %89 = vector.broadcast %c5_i32_15 : i32 to vector<1x128xi32>
    %90 = arith.select %87, %89, %85 : vector<1x128xi1>, vector<1x128xi32>
    %91 = vector.extract_strided_slice %63 {offsets = [6, 0], sizes = [1, 128], strides = [1, 1]} : vector<8x128xf32> to vector<1x128xf32>
    %92 = arith.cmpf ogt, %91, %88 : vector<1x128xf32>
    %93 = arith.select %92, %91, %88 : vector<1x128xi1>, vector<1x128xf32>
    %c6_i32_16 = arith.constant 6 : i32
    %94 = vector.broadcast %c6_i32_16 : i32 to vector<1x128xi32>
    %95 = arith.select %92, %94, %90 : vector<1x128xi1>, vector<1x128xi32>
    %96 = vector.extract_strided_slice %63 {offsets = [7, 0], sizes = [1, 128], strides = [1, 1]} : vector<8x128xf32> to vector<1x128xf32>
    %97 = arith.cmpf ogt, %96, %93 : vector<1x128xf32>
    %c7_i32_17 = arith.constant 7 : i32
    %98 = vector.broadcast %c7_i32_17 : i32 to vector<1x128xi32>
    %99 = arith.select %97, %98, %95 : vector<1x128xi1>, vector<1x128xi32>
    %100 = vector.broadcast %99 : vector<1x128xi32> to vector<8x128xi32>
    %101 = arith.cmpi eq, %20, %100 : vector<8x128xi32>
    %102 = arith.ori %61, %101 : vector<8x128xi1>
    %cst_18 = arith.constant 0xFF800000 : f32
    %103 = vector.broadcast %cst_18 : f32 to vector<8x128xf32>
    %104 = arith.select %102, %19, %103 : vector<8x128xi1>, vector<8x128xf32>
    %105 = vector.broadcast %56 : vector<1x128xf32> to vector<8x128xf32>
    %106 = arith.subf %104, %105 : vector<8x128xf32>
    %107 = math.exp %106 : vector<8x128xf32>
    %cst_19 = arith.constant dense<0.000000e+00> : vector<128xf32>
    %108 = vector.multi_reduction <add>, %107, %cst_19 [0] : vector<8x128xf32> to vector<128xf32>
    %109 = vector.shape_cast %108 : vector<128xf32> to vector<1x128xf32>
    %110 = tpu.reciprocal %109 : vector<1x128xf32> -> vector<1x128xf32>
    %111 = vector.broadcast %110 : vector<1x128xf32> to vector<8x128xf32>
    %112 = arith.mulf %107, %111 : vector<8x128xf32>
    %c0_20 = arith.constant 0 : index
    %c0_21 = arith.constant 0 : index
    %113 = vector.load %arg5[%c0_20, %c0_21] : memref<8x128xf32, #tpu.memory_space<vmem>>, vector<8x128xf32>
    tpu.vector_store %arg5[%c0_20, %c0_21], %112 {strides = array<i32>} : memref<8x128xf32, #tpu.memory_space<vmem>>, vector<8x128xf32>,
    %114 = tpu.concatenate %58, %99 in 0 : vector<1x128xi32>, vector<1x128xi32> -> vector<2x128xi32>
    %c0_22 = arith.constant 0 : index
    %c0_23 = arith.constant 0 : index
    %115 = vector.load %arg6[%c0_22, %c0_23] : memref<2x128xi32, #tpu.memory_space<vmem>>, vector<2x128xi32>
    tpu.vector_store %arg6[%c0_22, %c0_23], %114 {strides = array<i32>} : memref<2x128xi32, #tpu.memory_space<vmem>>, vector<2x128xi32>,
    return
  }
  func.func @transform_0(%arg0: i32) -> (i32, i32) {
    %c0_i32 = arith.constant 0 : i32
    %c0_i32_0 = arith.constant 0 : i32
    return %arg0, %c0_i32 : i32, i32
  }
  func.func @transform_1(%arg0: i32) -> (i32, i32) {
    %c0_i32 = arith.constant 0 : i32
    %c0_i32_0 = arith.constant 0 : i32
    return %c0_i32, %arg0 : i32, i32
  }
  func.func @transform_2(%arg0: i32) -> (i32, i32) {
    %c0_i32 = arith.constant 0 : i32
    %c0_i32_0 = arith.constant 0 : i32
    %c0_i32_1 = arith.constant 0 : i32
    return %c0_i32, %c0_i32_0 : i32, i32
  }
  func.func @transform_3(%arg0: i32) -> (i32, i32) {
    %c0_i32 = arith.constant 0 : i32
    %c0_i32_0 = arith.constant 0 : i32
    %c0_i32_1 = arith.constant 0 : i32
    return %c0_i32, %c0_i32_0 : i32, i32
  }
  func.func @transform_4(%arg0: i32) -> (i32, i32) {
    %c0_i32 = arith.constant 0 : i32
    %c0_i32_0 = arith.constant 0 : i32
    return %c0_i32, %arg0 : i32, i32
  }
  func.func @transform_5(%arg0: i32) -> (i32, i32) {
    %c0_i32 = arith.constant 0 : i32
    %c0_i32_0 = arith.constant 0 : i32
    return %c0_i32, %arg0 : i32, i32
  }
}

</mosaic_0001>

<bundles_post_ra>
// kernel: tpu_custom_call.1
= control target key start
LH: loop header
LB: loop body
LE: loop exit
PB: predicated region body
PF: predicated region fallthrough
CT: control target
= control target key end

     0   :  { %11 = vsyncpa [#allocation3], 0  ;;  %vm45_vm0 = vcmask 261120   ;;  %s624_s0 = inlined_call_operand.vmem [shape: f32[16,32], index: 0, kind: input, shape index: {}]   ;;  %s625_s1 = inlined_call_operand.vmem [shape: f32[8,16], index: 1, kind: input, shape index: {}]   ;;  %s626_s2 = inlined_call_operand.vmem [shape: f32[32,16], index: 2, kind: input, shape index: {}]   ;;  %s627_s3 = inlined_call_operand.vmem [shape: f32[1,16], index: 3, kind: input, shape index: {}]   ;;  %s628_s4 = inlined_call_operand.hbm [shape: f32[8,16], index: 4, kind: output, shape index: {0}]   ;;  %s629_s5 = inlined_call_operand.hbm [shape: s32[2,16], index: 5, kind: output, shape index: {1}]  }
   0x1   :  { %v40_v0 = vld [vmem:[%s626_s2 + $0x18] sm:$0xff]  ;;  %v39_v1 = vld [vmem:[%s626_s2 + $0x10] sm:$0xff]  ;;  %v38_v2 = vld [vmem:[%s626_s2 + $0x8] sm:$0xff] }
   0x2   :  { %106 = vmatpush.msra.mxu0 %v40_v0  ;;  %392 = vmatpush.msra.mxu1 %v40_v0  ;;  %v37_v3 = vld [vmem:[%s626_s2] sm:$0xff] }
   0x3   :  { %393 = vmatpush.msra.mxu2 %v40_v0  ;;  %394 = vmatpush.msra.mxu3 %v40_v0  ;;  %v21_v4 = vld [vmem:[%s624_s0] sm:$0xff] }
   0x4   :  { %107 = vmatpush.msra.mxu0 %v39_v1  ;;  %395 = vmatpush.msra.mxu1 %v39_v1  ;;  %v25_v5 = vld [vmem:[%s624_s0 + $0x20] sm:$0xff] }
   0x5   :  { %396 = vmatpush.msra.mxu2 %v39_v1  ;;  %397 = vmatpush.msra.mxu3 %v39_v1  ;;  %v29_v6 = vld [vmem:[%s624_s0 + $0x40] sm:$0xff] }
   0x6   :  { %108 = vmatpush.msra.mxu0 %v38_v2  ;;  %398 = vmatpush.msra.mxu1 %v38_v2  ;;  %v33_v7 = vld [vmem:[%s624_s0 + $0x60] sm:$0xff] }
   0x7   :  { %399 = vmatpush.msra.mxu2 %v38_v2  ;;  %400 = vmatpush.msra.mxu3 %v38_v2 }
   0x8   :  { %109 = vmatpush.msra.mxu0 %v37_v3  ;;  %401 = vmatpush.msra.mxu1 %v37_v3 }
   0x9   :  { %12 = vsyncpa [#allocation5], 0  ;;  %376 = vmatmul.msk.f32.vlgmr.msra.gmra.mxu0 %vm45_vm0, %v21_v4  ;;  %380 = vmatmul.msk.f32.vlgmr.msra.gmra.mxu1 %vm45_vm0, %v25_v5  ;;  %v22_v8 = vld [vmem:[%s624_s0 + $0x8] sm:$0xff]  ;;  %v23_v12 = vld [vmem:[%s624_s0 + $0x10] sm:$0xff]  ;;  %s362_s11 = sshll.u32 %s629_s5, 4  ;;  %s470_s5 = smov [#allocation2]   ;;  %s363_s11 = int_to_ptr.hbm [resolvable:$true] %s362_s11 }
   0xa   :  { %402 = vmatpush.msra.mxu2 %v37_v3  ;;  %403 = vmatpush.msra.mxu3 %v37_v3  ;;  %v26_v9 = vld [vmem:[%s624_s0 + $0x28] sm:$0xff]  ;;  %v27_v13 = vld [vmem:[%s624_s0 + $0x30] sm:$0xff]  ;;  %v24_v16 = vld [vmem:[%s624_s0 + $0x18] sm:$0xff]  ;;  %s349_s12 = sshll.u32 %s470_s5, 4  ;;  %s351_s15 = sshll.u32 %s628_s4, 4  ;;  %s350_s12 = int_to_ptr.vmem [resolvable:$true] %s349_s12  ;;  %s352_s15 = int_to_ptr.hbm [resolvable:$true] %s351_s15 }
   0xb   :  { %384 = vmatmul.msk.f32.vlgmr.msra.gmra.mxu2 %vm45_vm0, %v29_v6  ;;  %388 = vmatmul.msk.f32.vlgmr.msra.gmra.mxu3 %vm45_vm0, %v33_v7  ;;  %v30_v10 = vld [vmem:[%s624_s0 + $0x48] sm:$0xff]  ;;  %v31_v14 = vld [vmem:[%s624_s0 + $0x50] sm:$0xff]  ;;  %v28_v17 = vld [vmem:[%s624_s0 + $0x38] sm:$0xff] }
   0xc   :  { %v34_v11 = vld [vmem:[%s624_s0 + $0x68] sm:$0xff]  ;;  %v35_v15 = vld [vmem:[%s624_s0 + $0x70] sm:$0xff]  ;;  %v32_v18 = vld [vmem:[%s624_s0 + $0x58] sm:$0xff] }
   0xd   :  { %v36_v19 = vld [vmem:[%s624_s0 + $0x78] sm:$0xff]  ;;  %v407_v20 = vld [vmem:[%s627_s3] ss:$0 sm:$0xff] }
   0xe   :  { %v206_v4 = vld [vmem:[%s625_s1] sm:$0xff]  ;;  %s469_s1 = smov [#allocation4]  }
   0xf   :  { %s360_s8 = sshll.u32 %s469_s1, 4  ;;  %s361_s8 = int_to_ptr.vmem [resolvable:$true] %s360_s8 }
  0x11   :  { %377 = vmatmul.msk.f32.gmra.mxu0 %vm45_vm0, %v22_v8  ;;  %381 = vmatmul.msk.f32.gmra.mxu1 %vm45_vm0, %v26_v9 }
  0x13   :  { %385 = vmatmul.msk.f32.gmra.mxu2 %vm45_vm0, %v30_v10  ;;  %389 = vmatmul.msk.f32.gmra.mxu3 %vm45_vm0, %v34_v11  ;;  %v468_v10 = vmov 0  }
  0x19   :  { %378 = vmatmul.msk.f32.gmra.mxu0 %vm45_vm0, %v23_v12  ;;  %382 = vmatmul.msk.f32.gmra.mxu1 %vm45_vm0, %v27_v13 }
  0x1b   :  { %386 = vmatmul.msk.f32.gmra.mxu2 %vm45_vm0, %v31_v14  ;;  %390 = vmatmul.msk.f32.gmra.mxu3 %vm45_vm0, %v35_v15 }
  0x21   :  { %379 = vmatmul.msk.f32.gmra.mxu0 %vm45_vm0, %v24_v16  ;;  %383 = vmatmul.msk.f32.gmra.mxu1 %vm45_vm0, %v28_v17 }
  0x23   :  { %387 = vmatmul.msk.f32.gmra.mxu2 %vm45_vm0, %v32_v18  ;;  %391 = vmatmul.msk.f32.gmra.mxu3 %vm45_vm0, %v36_v19 }
  0x86   :  { %v111_v21 = vpop.f32.mrf.mxu0  ;;  %v123_v27 = vpop.f32.mrf.mxu1 }
  0x87   :  { %v112_v22 = vadd.f32 %v407_v20, %v111_v21  ;;  %v124_v30 = vadd.f32 %v407_v20, %v123_v27 }
  0x89   :  { %159 = vxpose.xlu0.b32.start [1/16] (narrow) %v112_v22, 16 }
  0x8e   :  { %v114_v23 = vpop.f32.mrf.mxu0  ;;  %v126_v31 = vpop.f32.mrf.mxu1 }
  0x8f   :  { %v115_v24 = vadd.f32 %v407_v20, %v114_v23  ;;  %v127_v32 = vadd.f32 %v407_v20, %v126_v31  ;;  %v135_v36 = vpop.f32.mrf.mxu2  ;;  %v147_v44 = vpop.f32.mrf.mxu3 }
  0x90   :  { %v136_v38 = vadd.f32 %v407_v20, %v135_v36  ;;  %v148_v46 = vadd.f32 %v407_v20, %v147_v44 }
  0x91   :  { %160 = vxpose.xlu0.b32.cont [2/16] (narrow) %v115_v24, 16 }
  0x96   :  { %v117_v25 = vpop.f32.mrf.mxu0  ;;  %v129_v33 = vpop.f32.mrf.mxu1 }
  0x97   :  { %v118_v26 = vadd.f32 %v407_v20, %v117_v25  ;;  %v130_v34 = vadd.f32 %v407_v20, %v129_v33  ;;  %v138_v39 = vpop.f32.mrf.mxu2  ;;  %v150_v47 = vpop.f32.mrf.mxu3 }
  0x98   :  { %v139_v40 = vadd.f32 %v407_v20, %v138_v39  ;;  %v151_v48 = vadd.f32 %v407_v20, %v150_v47 }
  0x99   :  { %161 = vxpose.xlu0.b32.cont [3/16] (narrow) %v118_v26, 16 }
  0x9e   :  { %v120_v28 = vpop.f32.mrf.mxu0  ;;  %v132_v35 = vpop.f32.mrf.mxu1 }
  0x9f   :  { %v121_v29 = vadd.f32 %v407_v20, %v120_v28  ;;  %v133_v37 = vadd.f32 %v407_v20, %v132_v35  ;;  %v141_v41 = vpop.f32.mrf.mxu2  ;;  %v153_v49 = vpop.f32.mrf.mxu3 }
  0xa0   :  { %v142_v42 = vadd.f32 %v407_v20, %v141_v41  ;;  %v154_v50 = vadd.f32 %v407_v20, %v153_v49 }
  0xa1   :  { %162 = vxpose.xlu0.b32.cont [4/16] (narrow) %v121_v29, 16 }
  0xa7   :  { %v144_v43 = vpop.f32.mrf.mxu2  ;;  %v156_v51 = vpop.f32.mrf.mxu3 }
  0xa8   :  { %v145_v45 = vadd.f32 %v407_v20, %v144_v43  ;;  %v157_v52 = vadd.f32 %v407_v20, %v156_v51 }
  0xa9   :  { %163 = vxpose.xlu0.b32.cont [5/16] (narrow) %v124_v30, 16  ;;  %v209_v30 = vlaneseq }
  0xab   :  { %v210_v35 = vshrl.u32 %v209_v30, 7 }
  0xb1   :  { %164 = vxpose.xlu0.b32.cont [6/16] (narrow) %v127_v32, 16 }
  0xb9   :  { %165 = vxpose.xlu0.b32.cont [7/16] (narrow) %v130_v34, 16 }
  0xc1   :  { %166 = vxpose.xlu0.b32.cont [8/16] (narrow) %v133_v37, 16 }
  0xc9   :  { %167 = vxpose.xlu0.b32.cont [9/16] (narrow) %v136_v38, 16 }
  0xd1   :  { %168 = vxpose.xlu0.b32.cont [10/16] (narrow) %v139_v40, 16 }
  0xd9   :  { %169 = vxpose.xlu0.b32.cont [11/16] (narrow) %v142_v42, 16 }
  0xe1   :  { %170 = vxpose.xlu0.b32.cont [12/16] (narrow) %v145_v45, 16 }
  0xe9   :  { %171 = vxpose.xlu0.b32.cont [13/16] (narrow) %v148_v46, 16 }
  0xf1   :  { %172 = vxpose.xlu0.b32.cont [14/16] (narrow) %v151_v48, 16 }
  0xf9   :  { %173 = vxpose.xlu0.b32.cont [15/16] (narrow) %v154_v50, 16 }
 0x101   :  { %174 = vxpose.xlu0.b32.end [16/16] (narrow) %v157_v52, 16 }
 0x12d   :  { %v175_v53 = vpop.trf.xlu0 }
 0x135   :  { %v176_v54 = vpop.trf.xlu0 }
 0x136   :  { %v192_v55 = vand.u32 2147483647, %v176_v54  ;;  %v191_v2 = vmax.f32 %v176_v54, 0.0 }
 0x138   :  { %v193_v56 = vsub.f32 0.0, %v192_v55 }
 0x13a   :  { %v194_v57 = vmul.f32 1.442695, %v193_v56 }
 0x13c   :  { %408 = vpow2.f32 %v194_v57 }
 0x142   :  { %v409_v58 = vpop.eup %408 }
 0x143   :  { %v196_v59 = vadd.f32 1.0, %v409_v58  ;;  %v199_v60 = vmul.f32 -0.5, %v409_v58  ;;  %v202_v62 = vand.u32 2147483647, %v409_v58 }
 0x145   :  { %410 = vlog2.f32 %v196_v59  ;;  %v200_v61 = vadd.f32 1.0, %v199_v60  ;;  %vm203_vm1 = vcmp.lt.f32.partialorder %v202_v62, 0.0004427343 }
 0x147   :  { %v201_v1 = vmul.f32 %v409_v58, %v200_v61 }
 0x14b   :  { %v411_v63 = vpop.eup %410 }
 0x14c   :  { %v198_v0 = vmul.f32 0.6931472, %v411_v63 }
 0x14e   :  { %v204_v3 = vsel %vm203_vm1, %v201_v1, %v198_v0  ;;  %vm341_vm1 = vcmask 1040384  }
 0x14f   :  { %v205_v5 = vadd.f32 %v204_v3, %v191_v2 }
 0x151   :  { %v207_v6 = vmul.f32 %v206_v4, %v205_v5 }
 0x153   :  { %v583_v7 = vadd.f32 %v207_v6, %v175_v53 }
 0x155   :  { %v212_v8 = vrot.slane %v583_v7, 7 }
 0x157   :  { %vm214_vm2 = vcmp.gt.f32.partialorder %v583_v7, %v212_v8 }
 0x158   :  { %v215_v9 = vsel %vm214_vm2, %v583_v7, %v212_v8  ;;  %v216_v11 = vsel %vm214_vm2, 1, %v468_v10 }
 0x159   :  { %v218_v12 = vrot.slane %v215_v9, 7  ;;  %v222_v13 = vrot.slane %v216_v11, 7 }
 0x15b   :  { %vm220_vm3 = vcmp.gt.f32.partialorder %v583_v7, %v218_v12 }
 0x15c   :  { %v221_v14 = vsel %vm220_vm3, %v583_v7, %v218_v12  ;;  %v223_v15 = vsel %vm220_vm3, 2, %v222_v13 }
 0x15d   :  { %v225_v16 = vrot.slane %v221_v14, 7  ;;  %v229_v17 = vrot.slane %v223_v15, 7 }
 0x15f   :  { %vm227_vm4 = vcmp.gt.f32.partialorder %v583_v7, %v225_v16 }
 0x160   :  { %v228_v18 = vsel %vm227_vm4, %v583_v7, %v225_v16  ;;  %v230_v19 = vsel %vm227_vm4, 3, %v229_v17 }
 0x161   :  { %v232_v20 = vrot.slane %v228_v18, 7  ;;  %v236_v21 = vrot.slane %v230_v19, 7 }
 0x163   :  { %vm234_vm5 = vcmp.gt.f32.partialorder %v583_v7, %v232_v20 }
 0x164   :  { %v235_v22 = vsel %vm234_vm5, %v583_v7, %v232_v20  ;;  %v237_v23 = vsel %vm234_vm5, 4, %v236_v21 }
 0x165   :  { %v239_v24 = vrot.slane %v235_v22, 7  ;;  %v243_v25 = vrot.slane %v237_v23, 7 }
 0x167   :  { %vm241_vm6 = vcmp.gt.f32.partialorder %v583_v7, %v239_v24 }
 0x168   :  { %v242_v26 = vsel %vm241_vm6, %v583_v7, %v239_v24  ;;  %v244_v27 = vsel %vm241_vm6, 5, %v243_v25 }
 0x169   :  { %v246_v28 = vrot.slane %v242_v26, 7  ;;  %v250_v29 = vrot.slane %v244_v27, 7 }
 0x16b   :  { %vm248_vm7 = vcmp.gt.f32.partialorder %v583_v7, %v246_v28 }
 0x16c   :  { %v249_v31 = vsel %vm248_vm7, %v583_v7, %v246_v28  ;;  %v251_v32 = vsel %vm248_vm7, 6, %v250_v29 }
 0x16d   :  { %v253_v33 = vrot.slane %v249_v31, 7  ;;  %v257_v34 = vrot.slane %v251_v32, 7 }
 0x16f   :  { %vm599_vm8 = vcmp.gt.f32.partialorder %v583_v7, %v253_v33 }
 0x170   :  { %v258_v37 = vsel %vm599_vm8, 7, %v257_v34  ;;  %v256_v3 = vsel %vm599_vm8, %v583_v7, %v253_v33 }
 0x171   :  { %v259_v38 = vperm.slane %v258_v37, 7  ;;  %v339_v5 = vrot.slane %v258_v37, 7  ;;  %v313_v9 = vperm.slane %v256_v3, 7 }
 0x173   :  { %vm605_vm9 = vcmp.eq.s32.totalorder %v210_v35, %v259_v38 }
 0x174   :  { %v261_v40 = vsel %vm605_vm9, -inf, %v583_v7 }
 0x175   :  { %v263_v41 = vrot.slane %v261_v40, 7 }
 0x177   :  { %vm265_vm10 = vcmp.gt.f32.partialorder %v261_v40, %v263_v41 }
 0x178   :  { %v266_v42 = vsel %vm265_vm10, %v261_v40, %v263_v41  ;;  %v267_v43 = vsel %vm265_vm10, 1, %v468_v10 }
 0x179   :  { %v269_v44 = vrot.slane %v266_v42, 7  ;;  %v273_v45 = vrot.slane %v267_v43, 7 }
 0x17b   :  { %vm271_vm11 = vcmp.gt.f32.partialorder %v261_v40, %v269_v44 }
 0x17c   :  { %v272_v46 = vsel %vm271_vm11, %v261_v40, %v269_v44  ;;  %v274_v47 = vsel %vm271_vm11, 2, %v273_v45 }
 0x17d   :  { %v276_v48 = vrot.slane %v272_v46, 7  ;;  %v280_v49 = vrot.slane %v274_v47, 7 }
 0x17f   :  { %vm278_vm12 = vcmp.gt.f32.partialorder %v261_v40, %v276_v48 }
 0x180   :  { %v279_v50 = vsel %vm278_vm12, %v261_v40, %v276_v48  ;;  %v281_v51 = vsel %vm278_vm12, 3, %v280_v49 }
 0x181   :  { %v283_v52 = vrot.slane %v279_v50, 7  ;;  %v287_v53 = vrot.slane %v281_v51, 7 }
 0x183   :  { %vm285_vm13 = vcmp.gt.f32.partialorder %v261_v40, %v283_v52 }
 0x184   :  { %v286_v54 = vsel %vm285_vm13, %v261_v40, %v283_v52  ;;  %v288_v55 = vsel %vm285_vm13, 4, %v287_v53 }
 0x185   :  { %v290_v56 = vrot.slane %v286_v54, 7  ;;  %v294_v57 = vrot.slane %v288_v55, 7 }
 0x187   :  { %vm292_vm14 = vcmp.gt.f32.partialorder %v261_v40, %v290_v56 }
 0x188   :  { %v293_v58 = vsel %vm292_vm14, %v261_v40, %v290_v56  ;;  %v295_v59 = vsel %vm292_vm14, 5, %v294_v57 }
 0x189   :  { %v297_v60 = vrot.slane %v293_v58, 7  ;;  %v301_v61 = vrot.slane %v295_v59, 7 }
 0x18b   :  { %vm299_vm15 = vcmp.gt.f32.partialorder %v261_v40, %v297_v60 }
 0x18c   :  { %v300_v62 = vsel %vm299_vm15, %v261_v40, %v297_v60  ;;  %v302_v63 = vsel %vm299_vm15, 6, %v301_v61 }
 0x18d   :  { %v304_v0 = vrot.slane %v300_v62, 7  ;;  %v307_v1 = vrot.slane %v302_v63, 7 }
 0x18f   :  { %vm306_vm0 = vcmp.gt.f32.partialorder %v261_v40, %v304_v0 }
 0x190   :  { %v308_v2 = vsel %vm306_vm0, 7, %v307_v1 }
 0x191   :  { %v309_v4 = vperm.slane %v308_v2, 7  ;;  %v340_v6 = vrot.slane %v308_v2, 6 }
 0x193   :  { %vm310_vm2 = vcmp.eq.s32.totalorder %v210_v35, %v309_v4  ;;  %v342_v8 = vsel %vm341_vm1, %v339_v5, %v340_v6 }
 0x194   :  { %vm311_vm3 = vmor %vm605_vm9, %vm310_vm2  ;;  %343 = vst [vmem:[#allocation4] sm:$0x3] %v342_v8 }
 0x195   :  { %v312_v10 = vsel %vm311_vm3, %v583_v7, -inf  ;;  %365 = dma.vmem_to_hbm [thread:$0]  %s361_s8, 32, %s363_s11, [#allocation5]  }
 0x196   :  { %v314_v11 = vsub.f32 %v312_v10, %v313_v9 }
 0x198   :  { %v315_v12 = vmul.f32 1.442695, %v314_v11 }
 0x19a   :  { %412 = vpow2.f32 %v315_v12 }
 0x1a0   :  { %v413_v13 = vpop.eup %412 }
 0x1a1   :  { %v317_v14 = vrot.slane %v413_v13, 4 }
 0x1a3   :  { %v318_v15 = vadd.f32 %v413_v13, %v317_v14 }
 0x1a5   :  { %v319_v16 = vrot.slane %v318_v15, 2 }
 0x1a7   :  { %v320_v17 = vadd.f32 %v319_v16, %v318_v15 }
 0x1a9   :  { %v321_v18 = vrot.slane %v320_v17, 1 }
 0x1ab   :  { %v322_v19 = vadd.f32 %v321_v18, %v320_v17 }
 0x1ad   :  { %414 = vrcp.f32 %v322_v19  ;;  %v334_v23 = vand.u32 2147483648, %v322_v19  ;;  %v332_v25 = vand.u32 2147483647, %v322_v19  ;;  %vm328_vm5 = vweird.f32 %v322_v19 }
 0x1af   :  { %v335_v26 = vor.u32 1.1754944e-38, %v334_v23  ;;  %vm333_vm7 = vcmp.eq.f32.partialorder %v332_v25, 8.507059e+37 }
 0x1b3   :  { %v415_v20 = vpop.eup %414 }
 0x1b4   :  { %v324_v21 = vmul.f32 %v415_v20, %v322_v19  ;;  %vm329_vm4 = vweird.f32 %v415_v20 }
 0x1b5   :  { %vm330_vm6 = vmor %vm328_vm5, %vm329_vm4 }
 0x1b6   :  { %v325_v22 = vsub.f32 1.0, %v324_v21 }
 0x1b8   :  { %v326_v24 = vmul.f32 %v415_v20, %v325_v22 }
 0x1ba   :  { %v327_v7 = vadd.f32 %v415_v20, %v326_v24 }
 0x1bc   :  { %v331_v27 = vsel %vm330_vm6, %v415_v20, %v327_v7 }
 0x1bd   :  { %v336_v28 = vsel %vm333_vm7, %v335_v26, %v331_v27 }
 0x1be   :  { %v337_v29 = vmul.f32 %v413_v13, %v336_v28 }
 0x1c0   :  { %338 = vst [vmem:[#allocation2] sm:$0xff] %v337_v29 }
 0x1c1   :  { %354 = dma.vmem_to_hbm [thread:$0]  %s350_s12, 128, %s352_s15, [#allocation3]  }
 0x1c2   :  { %464 = dma.done.wait [#allocation3], 128  }
 0x1c3   :  { %465 = vsyncadd [#allocation3], 4294967168 }
 0x1c4   :  { %466 = dma.done.wait [#allocation5], 32  }
 0x1c5   :  { %467 = vsyncadd [#allocation5], 4294967264 }
 0x1c6   :  { %374 = vsyncpa [#allocation3], 1 }
 0x1c7   :  { %375 = vsyncpa [#allocation5], 1 }

</bundles_post_ra>
